<compile_context>
chip_gen: v5e
topology: v5e:2x2
jax: 0.10.0
libtpu: 0.0.40
codegen_flags: <defaults>
</compile_context>

<pallas_src>
import functools
import math

import jax
import jax.numpy as jnp
from jax import lax
from jax.experimental import pallas as pl
from jax.experimental.pallas import tpu as pltpu


# ---------------------------------------------------------------------------
# Per-generation tiling / VMEM plan
# ---------------------------------------------------------------------------
def _device_vmem_plan():
    """Return (target_block_bytes, vmem_limit_bytes) for the local TPU."""
    try:
        kind = jax.devices()[0].device_kind.lower()
    except Exception:
        kind = ""
    if ("v4" in kind) or ("v5" in kind) or ("v6" in kind):
        # 128 MiB physical VMEM: bigger blocks amortize ~0.35us/step overhead.
        return 4 * 1024 * 1024, 64 * 1024 * 1024
    # v7x (64 MiB physical VMEM per TC) and unknown chips: stay conservative
    # and leave headroom for the block-sized f32 temporaries.
    return 2 * 1024 * 1024, 48 * 1024 * 1024


def _pick_tile_rows(rows, features, dtype, target_block_bytes):
    """Row tile sized to ~target bytes per block, sublane aligned, capped.

    `features` should count the per-row width of every block-sized live value
    (inputs + intermediates), e.g. d_model + d_ff for the FFN kernel, so the
    f32 hidden activation is budgeted too.
    """
    itemsize = jnp.dtype(dtype).itemsize
    sub = 16 if itemsize == 2 else (32 if itemsize == 1 else 8)
    t = target_block_bytes // max(features * itemsize, 1)
    t = max(min(t, 2048), sub)
    t = (t // sub) * sub
    rows_rounded = ((rows + sub - 1) // sub) * sub
    t = min(t, rows_rounded)
    # Guarantee >= 2 grid steps when rows allow it so a "parallel" row axis
    # can shard across both v7x TensorCores (negligible cost on 1-TC chips).
    if t >= rows_rounded and rows_rounded > sub:
        half = -(-rows // 2)
        t = ((half + sub - 1) // sub) * sub
    return max(t, sub)


# ---------------------------------------------------------------------------
# Shared LayerNorm epilogue (torch.std semantics), single streaming pass
# ---------------------------------------------------------------------------
def _ln_epilogue(h, a, b, features, eps):
    """LayerNorm(h) on f32 `h` (rows, F): a * (h - mean)/(std + eps) + b."""
    s1 = jnp.sum(h, axis=-1, keepdims=True)
    s2 = jnp.sum(h * h, axis=-1, keepdims=True)
    mean = s1 * (1.0 / features)
    # unbiased variance (torch.std default, divide by N-1); clamp tiny
    # negative values produced by the sum-of-squares rearrangement.
    var = jnp.maximum((s2 - s1 * mean) * (1.0 / (features - 1)), 0.0)
    # Exact per-row reciprocal: operand is only (rows, 1); approx=True would
    # add ~1e-4 relative error for no measurable gain here.
    inv = pl.reciprocal(jnp.sqrt(var) + eps, approx=False)
    return (h - mean) * inv * a + b


# ---------------------------------------------------------------------------
# Kernel 1: standalone fused residual-add + LayerNorm (generic sublayers)
# ---------------------------------------------------------------------------
def _add_ln_kernel(x_ref, r_ref, a_ref, b_ref, o_ref, *, features, eps):
    h = x_ref[...].astype(jnp.float32) + r_ref[...].astype(jnp.float32)
    a = a_ref[...].astype(jnp.float32)
    b = b_ref[...].astype(jnp.float32)
    o_ref[...] = _ln_epilogue(h, a, b, features, eps).astype(o_ref.dtype)


def fused_add_layer_norm(x, residual, a_2, b_2, eps=1e-6, tile_rows=None):
    """LayerNorm(x + residual) with torch.std semantics (SublayerConnection)."""
    features = x.shape[-1]
    orig_shape = x.shape
    rows = math.prod(orig_shape[:-1])

    x2 = x.reshape(rows, features)
    r2 = residual.reshape(rows, features)
    a2 = a_2.reshape(1, features)
    b2 = b_2.reshape(1, features)

    target_block_bytes, vmem_limit = _device_vmem_plan()
    if tile_rows is None:
        tile_rows = _pick_tile_rows(rows, features, x.dtype, target_block_bytes)
    grid = (pl.cdiv(rows, tile_rows),)

    kernel = functools.partial(_add_ln_kernel, features=features, eps=eps)
    out = pl.pallas_call(
        kernel,
        out_shape=jax.ShapeDtypeStruct((rows, features), x.dtype),
        grid_spec=pltpu.PrefetchScalarGridSpec(
            num_scalar_prefetch=0,
            grid=grid,
            in_specs=[
                pl.BlockSpec((tile_rows, features), lambda i: (i, 0)),
                pl.BlockSpec((tile_rows, features), lambda i: (i, 0)),
                pl.BlockSpec((1, features), lambda i: (0, 0)),
                pl.BlockSpec((1, features), lambda i: (0, 0)),
            ],
            out_specs=pl.BlockSpec((tile_rows, features), lambda i: (i, 0)),
        ),
        compiler_params=pltpu.CompilerParams(
            dimension_semantics=("parallel",),
            vmem_limit_bytes=vmem_limit,
        ),
    )(x2, r2, a2, b2)
    return out.reshape(orig_shape)


# ---------------------------------------------------------------------------
# Kernel 2: fused scaled-dot-product attention + residual + LayerNorm
#   (residual is the query block itself, as in SublayerConnection)
# ---------------------------------------------------------------------------
def _attn_add_ln_kernel(q_ref, k_ref, v_ref, m_ref, a_ref, b_ref, o_ref,
                        *, features, eps, scale):
    q = q_ref[...][0].astype(jnp.float32)          # (tq, D) — also the residual
    k = k_ref[...][0].astype(jnp.float32)          # (Lk, D)
    v = v_ref[...][0].astype(jnp.float32)          # (Lk, D)
    # scores = q @ k^T (contract last dims directly; avoids an explicit transpose)
    s = lax.dot_general(q, k, (((1,), (1,)), ((), ())),
                        preferred_element_type=jnp.float32) * scale
    s = jnp.where(m_ref[...] > 0, s, -1e9)
    m = jnp.max(s, axis=-1, keepdims=True)
    e = jnp.exp(s - m)
    p = e * pl.reciprocal(jnp.sum(e, axis=-1, keepdims=True), approx=False)
    attn = jnp.dot(p, v, preferred_element_type=jnp.float32)   # (tq, D)
    h = attn + q                                               # residual add
    a = a_ref[...].astype(jnp.float32)
    b = b_ref[...].astype(jnp.float32)
    out = _ln_epilogue(h, a, b, features, eps).astype(o_ref.dtype)
    o_ref[...] = out[None]


def attention_add_layer_norm(q, k, v, mask, a_2, b_2, eps=1e-6, tile_q=None):
    """LayerNorm(q + attention(q, k, v, mask)) — one fused Pallas kernel."""
    B, Lq, D = q.shape
    Lk = k.shape[1]
    target_block_bytes, vmem_limit = _device_vmem_plan()
    if tile_q is None:
        tile_q = _pick_tile_rows(Lq, D, q.dtype, target_block_bytes)
    grid = (B, pl.cdiv(Lq, tile_q))

    mask_f = mask.astype(jnp.float32)              # (Lq, Lk), 1.0 = keep
    a2 = a_2.reshape(1, D)
    b2 = b_2.reshape(1, D)

    kernel = functools.partial(_attn_add_ln_kernel, features=D, eps=eps,
                               scale=1.0 / math.sqrt(D))
    return pl.pallas_call(
        kernel,
        out_shape=jax.ShapeDtypeStruct((B, Lq, D), q.dtype),
        grid_spec=pltpu.PrefetchScalarGridSpec(
            num_scalar_prefetch=0,
            grid=grid,
            in_specs=[
                pl.BlockSpec((1, tile_q, D), lambda b, i: (b, i, 0)),   # q / residual
                pl.BlockSpec((1, Lk, D), lambda b, i: (b, 0, 0)),        # k (full per batch)
                pl.BlockSpec((1, Lk, D), lambda b, i: (b, 0, 0)),        # v
                pl.BlockSpec((tile_q, Lk), lambda b, i: (i, 0)),         # mask
                pl.BlockSpec((1, D), lambda b, i: (0, 0)),               # a_2
                pl.BlockSpec((1, D), lambda b, i: (0, 0)),               # b_2
            ],
            out_specs=pl.BlockSpec((1, tile_q, D), lambda b, i: (b, i, 0)),
        ),
        compiler_params=pltpu.CompilerParams(
            dimension_semantics=("parallel", "parallel"),
            vmem_limit_bytes=vmem_limit,
        ),
    )(q, k, v, mask_f, a2, b2)


# ---------------------------------------------------------------------------
# Kernel 3: fused feed-forward (x@W1 -> ReLU -> @W2) + residual + LayerNorm
# ---------------------------------------------------------------------------
def _ffn_add_ln_kernel(x_ref, w1_ref, w2_ref, a_ref, b_ref, o_ref,
                       *, features, eps):
    x = x_ref[...].astype(jnp.float32)             # (tr, D)
    w1 = w1_ref[...].astype(jnp.float32)           # (D, F1)
    w2 = w2_ref[...].astype(jnp.float32)           # (F1, D)
    h1 = jnp.maximum(jnp.dot(x, w1, preferred_element_type=jnp.float32), 0.0)
    y = jnp.dot(h1, w2, preferred_element_type=jnp.float32)
    h = y + x                                      # residual add
    a = a_ref[...].astype(jnp.float32)
    b = b_ref[...].astype(jnp.float32)
    o_ref[...] = _ln_epilogue(h, a, b, features, eps).astype(o_ref.dtype)


def ffn_add_layer_norm(x, w1, w2, a_2, b_2, eps=1e-6, tile_rows=None):
    """LayerNorm(x + relu(x@W1)@W2) — one fused Pallas kernel."""
    orig_shape = x.shape
    D = x.shape[-1]
    d_ff = w1.shape[-1]
    rows = math.prod(orig_shape[:-1])
    x2 = x.reshape(rows, D)
    a2 = a_2.reshape(1, D)
    b2 = b_2.reshape(1, D)

    target_block_bytes, vmem_limit = _device_vmem_plan()
    if tile_rows is None:
        # Budget the (rows, d_ff) f32 hidden activation as well as the x block.
        tile_rows = _pick_tile_rows(rows, D + d_ff, x.dtype, target_block_bytes)
    grid = (pl.cdiv(rows, tile_rows),)

    kernel = functools.partial(_ffn_add_ln_kernel, features=D, eps=eps)
    out = pl.pallas_call(
        kernel,
        out_shape=jax.ShapeDtypeStruct((rows, D), x.dtype),
        grid_spec=pltpu.PrefetchScalarGridSpec(
            num_scalar_prefetch=0,
            grid=grid,
            in_specs=[
                pl.BlockSpec((tile_rows, D), lambda i: (i, 0)),
                pl.BlockSpec((D, d_ff), lambda i: (0, 0)),   # resident weights
                pl.BlockSpec((d_ff, D), lambda i: (0, 0)),
                pl.BlockSpec((1, D), lambda i: (0, 0)),
                pl.BlockSpec((1, D), lambda i: (0, 0)),
            ],
            out_specs=pl.BlockSpec((tile_rows, D), lambda i: (i, 0)),
        ),
        compiler_params=pltpu.CompilerParams(
            dimension_semantics=("parallel",),
            vmem_limit_bytes=vmem_limit,
        ),
    )(x2, w1, w2, a2, b2)
    return out.reshape(orig_shape)


# ---------------------------------------------------------------------------
# DecoderLayer forwards (inference: dropout = identity)
# ---------------------------------------------------------------------------
def decoder_layer(x, memory, src_mask, tgt_mask, params,
                  self_attn, src_attn, feed_forward, eps=1e-6):
    """Generic path: arbitrary injected JAX sub-modules + Pallas add+LN.

    # TODO(synk): self_attn / src_attn / feed_forward are constructor-injected
    # modules with no definition in the spec; they are taken as JAX callables
    # and only the SublayerConnection (add + LayerNorm) is Pallas-fused here.
    """
    m = memory
    x = fused_add_layer_norm(x, self_attn(x, x, x, tgt_mask),
                             params["a0"], params["b0"], eps)
    x = fused_add_layer_norm(x, src_attn(x, m, m, src_mask),
                             params["a1"], params["b1"], eps)
    return fused_add_layer_norm(x, feed_forward(x),
                                params["a2"], params["b2"], eps)


def decoder_layer_fused(x, memory, src_mask, tgt_mask, params, ffn_w1, ffn_w2,
                        eps=1e-6):
    """Fully fused path: each sublayer's producer kernel ends with add+LN."""
    x = attention_add_layer_norm(x, x, x, tgt_mask,
                                 params["a0"], params["b0"], eps)
    x = attention_add_layer_norm(x, memory, memory, src_mask,
                                 params["a1"], params["b1"], eps)
    return ffn_add_layer_norm(x, ffn_w1, ffn_w2,
                              params["a2"], params["b2"], eps)


# ---------------------------------------------------------------------------
# Pure-JAX references and demo stand-ins for the injected modules
# ---------------------------------------------------------------------------
def _attention(q, k, v, mask):
    d = q.shape[-1]
    scores = jnp.einsum("bqd,bkd->bqk", q, k,
                        precision=lax.Precision.HIGHEST) / math.sqrt(d)
    scores = jnp.where(mask[None, :, :], scores, -1e9)
    p = jax.nn.softmax(scores, axis=-1)
    return jnp.einsum("bqk,bkd->bqd", p, v, precision=lax.Precision.HIGHEST)


def _feed_forward(x, w1, w2):
    h = jnp.maximum(jnp.dot(x, w1, precision=lax.Precision.HIGHEST), 0.0)
    return jnp.dot(h, w2, precision=lax.Precision.HIGHEST)


def _reference_add_layer_norm(x, r, a_2, b_2, eps=1e-6):
    h = (x + r).astype(jnp.float32)
    mean = jnp.mean(h, axis=-1, keepdims=True)
    d = h - mean
    var = jnp.sum(d * d, axis=-1, keepdims=True) / (h.shape[-1] - 1)
    return (a_2 * d / (jnp.sqrt(var) + eps) + b_2).astype(x.dtype)


def _reference_decoder_layer(x, memory, src_mask, tgt_mask, params,
                             self_attn, src_attn, feed_forward, eps=1e-6):
    m = memory
    x = _reference_add_layer_norm(x, self_attn(x, x, x, tgt_mask),
                                  params["a0"], params["b0"], eps)
    x = _reference_add_layer_norm(x, src_attn(x, m, m, src_mask),
                                  params["a1"], params["b1"], eps)
    return _reference_add_layer_norm(x, feed_forward(x),
                                     params["a2"], params["b2"], eps)


if __name__ == "__main__":
    key = jax.random.PRNGKey(0)
    batch, tgt_len, src_len = 2, 8, 8
    d_model, d_ff = 128, 256          # lane-dense feature axis (multiple of 128)

    k1, k2, k3, k4, k5 = jax.random.split(key, 5)
    x = jax.random.normal(k1, (batch, tgt_len, d_model), dtype=jnp.float32)
    memory = jax.random.normal(k2, (batch, src_len, d_model), dtype=jnp.float32)
    tgt_mask = jnp.tril(jnp.ones((tgt_len, tgt_len), jnp.float32)).astype(bool)
    src_mask = jnp.ones((tgt_len, src_len), dtype=bool)

    # Deterministic stand-in weights for the injected feed_forward module.
    w1 = 0.02 * jax.random.normal(k3, (d_model, d_ff), dtype=jnp.float32)
    w2 = 0.02 * jax.random.normal(k4, (d_ff, d_model), dtype=jnp.float32)

    # nn.Parameter(torch.ones / torch.zeros) init for each of the 3 LayerNorms.
    params = {
        "a0": jnp.ones((d_model,), jnp.float32), "b0": jnp.zeros((d_model,), jnp.float32),
        "a1": jnp.ones((d_model,), jnp.float32), "b1": jnp.zeros((d_model,), jnp.float32),
        "a2": jnp.ones((d_model,), jnp.float32), "b2": jnp.zeros((d_model,), jnp.float32),
    }

    # Injected callables for the generic path (identical functions to the
    # reference stand-ins, so only the Pallas add+LN differs there).
    self_attn = lambda q, k, v, m: _attention(q, k, v, m)
    src_attn = lambda q, k, v, m: _attention(q, k, v, m)
    feed_forward = lambda h: _feed_forward(h, w1, w2)

    # 1) Standalone fused add+LayerNorm kernel, f32 boundary.
    r = jax.random.normal(k5, x.shape, dtype=jnp.float32)
    got = jax.block_until_ready(
        fused_add_layer_norm(x, r, params["a0"], params["b0"], eps=1e-6))
    want = _reference_add_layer_norm(x, r, params["a0"], params["b0"], eps=1e-6)
    assert got.shape == x.shape and got.dtype == x.dtype
    assert jnp.allclose(got, want, atol=3e-5, rtol=3e-5)

    # 2) Same kernel with bf16 activations at the boundary (f32 math inside).
    xb, rb = x.astype(jnp.bfloat16), r.astype(jnp.bfloat16)
    got_b = jax.block_until_ready(
        fused_add_layer_norm(xb, rb, params["a0"], params["b0"], eps=1e-6))
    want_b = _reference_add_layer_norm(xb.astype(jnp.float32),
                                       rb.astype(jnp.float32),
                                       params["a0"], params["b0"], eps=1e-6)
    assert got_b.dtype == jnp.bfloat16
    assert jnp.allclose(got_b.astype(jnp.float32), want_b, atol=5e-2, rtol=5e-2)

    # 3) Generic DecoderLayer (injected JAX sub-modules + Pallas add+LN).
    out_generic = jax.block_until_ready(
        decoder_layer(x, memory, src_mask, tgt_mask, params,
                      self_attn, src_attn, feed_forward, eps=1e-6))
    ref = _reference_decoder_layer(x, memory, src_mask, tgt_mask, params,
                                   self_attn, src_attn, feed_forward, eps=1e-6)
    assert out_generic.shape == x.shape
    assert jnp.allclose(out_generic, ref, atol=1e-4, rtol=1e-4)

    # 4) Fully fused DecoderLayer (Pallas attention+LN and FFN+LN kernels).
    #    Looser tolerance: the in-kernel MXU dots and the XLA reference may
    #    use different f32 matmul pass counts on TPU.
    out_fused = jax.block_until_ready(
        decoder_layer_fused(x, memory, src_mask, tgt_mask, params, w1, w2,
                            eps=1e-6))
    assert out_fused.shape == x.shape
    assert jnp.allclose(out_fused, ref, atol=5e-2, rtol=5e-2)

    print("KERNEL_OK")
</pallas_src>

<mosaic_0001>
module attributes {stable_mosaic.version = 11 : i64} {
  func.func @_add_ln_kernel(%arg0: i32, %arg1: memref<8x128xf32, #tpu.memory_space<vmem>>, %arg2: memref<8x128xf32, #tpu.memory_space<vmem>>, %arg3: memref<1x128xf32, #tpu.memory_space<vmem>>, %arg4: memref<1x128xf32, #tpu.memory_space<vmem>>, %arg5: memref<8x128xf32, #tpu.memory_space<vmem>>) attributes {dimension_semantics = [#tpu.dimension_semantics<parallel>], iteration_bounds = array<i64: 2>, scalar_prefetch = 0 : i64, scratch_operands = 0 : i64, tpu.core_type = #tpu.core_type<tc>, window_params = [{transform_indices = @transform_0, window_bounds = array<i64: 8, 128>}, {transform_indices = @transform_1, window_bounds = array<i64: 8, 128>}, {pipeline_mode = #tpu.pipeline_mode<synchronous>, transform_indices = @transform_2, window_bounds = array<i64: 1, 128>}, {pipeline_mode = #tpu.pipeline_mode<synchronous>, transform_indices = @transform_3, window_bounds = array<i64: 1, 128>}, {transform_indices = @transform_4, window_bounds = array<i64: 8, 128>}]} {
    %c0 = arith.constant 0 : index
    %c0_0 = arith.constant 0 : index
    %0 = vector.load %arg1[%c0, %c0_0] : memref<8x128xf32, #tpu.memory_space<vmem>>, vector<8x128xf32>
    %c0_1 = arith.constant 0 : index
    %c0_2 = arith.constant 0 : index
    %1 = vector.load %arg2[%c0_1, %c0_2] : memref<8x128xf32, #tpu.memory_space<vmem>>, vector<8x128xf32>
    %2 = arith.addf %0, %1 : vector<8x128xf32>
    %c0_3 = arith.constant 0 : index
    %c0_4 = arith.constant 0 : index
    %3 = vector.load %arg3[%c0_3, %c0_4] : memref<1x128xf32, #tpu.memory_space<vmem>>, vector<1x128xf32>
    %c0_5 = arith.constant 0 : index
    %c0_6 = arith.constant 0 : index
    %4 = vector.load %arg4[%c0_5, %c0_6] : memref<1x128xf32, #tpu.memory_space<vmem>>, vector<1x128xf32>
    %cst = arith.constant dense<0.000000e+00> : vector<8xf32>
    %5 = vector.multi_reduction <add>, %2, %cst [1] : vector<8x128xf32> to vector<8xf32>
    %6 = vector.shape_cast %5 : vector<8xf32> to vector<8x1xf32>
    %7 = arith.mulf %2, %2 : vector<8x128xf32>
    %cst_7 = arith.constant dense<0.000000e+00> : vector<8xf32>
    %8 = vector.multi_reduction <add>, %7, %cst_7 [1] : vector<8x128xf32> to vector<8xf32>
    %9 = vector.shape_cast %8 : vector<8xf32> to vector<8x1xf32>
    %cst_8 = arith.constant 7.812500e-03 : f32
    %10 = vector.broadcast %cst_8 : f32 to vector<8x1xf32>
    %11 = arith.mulf %6, %10 : vector<8x1xf32>
    %12 = arith.mulf %6, %11 : vector<8x1xf32>
    %13 = arith.subf %9, %12 : vector<8x1xf32>
    %cst_9 = arith.constant 0.00787401571 : f32
    %14 = vector.broadcast %cst_9 : f32 to vector<8x1xf32>
    %15 = arith.mulf %13, %14 : vector<8x1xf32>
    %cst_10 = arith.constant 0.000000e+00 : f32
    %16 = vector.broadcast %cst_10 : f32 to vector<8x1xf32>
    %17 = arith.maximumf %15, %16 : vector<8x1xf32>
    %18 = math.sqrt %17 : vector<8x1xf32>
    %cst_11 = arith.constant 9.99999997E-7 : f32
    %19 = vector.broadcast %cst_11 : f32 to vector<8x1xf32>
    %20 = arith.addf %18, %19 : vector<8x1xf32>
    %21 = tpu.reciprocal %20 : vector<8x1xf32> -> vector<8x1xf32>
    %22 = vector.broadcast %11 : vector<8x1xf32> to vector<8x128xf32>
    %23 = arith.subf %2, %22 : vector<8x128xf32>
    %24 = vector.broadcast %21 : vector<8x1xf32> to vector<8x128xf32>
    %25 = arith.mulf %23, %24 : vector<8x128xf32>
    %26 = vector.broadcast %3 : vector<1x128xf32> to vector<8x128xf32>
    %27 = arith.mulf %25, %26 : vector<8x128xf32>
    %28 = vector.broadcast %4 : vector<1x128xf32> to vector<8x128xf32>
    %29 = arith.addf %27, %28 : vector<8x128xf32>
    %c0_12 = arith.constant 0 : index
    %c0_13 = arith.constant 0 : index
    %30 = vector.load %arg5[%c0_12, %c0_13] : memref<8x128xf32, #tpu.memory_space<vmem>>, vector<8x128xf32>
    tpu.vector_store %arg5[%c0_12, %c0_13], %29 {strides = array<i32>} : memref<8x128xf32, #tpu.memory_space<vmem>>, vector<8x128xf32>,
    return
  }
  func.func @transform_0(%arg0: i32) -> (i32, i32) {
    %c0_i32 = arith.constant 0 : i32
    %c0_i32_0 = arith.constant 0 : i32
    return %arg0, %c0_i32 : i32, i32
  }
  func.func @transform_1(%arg0: i32) -> (i32, i32) {
    %c0_i32 = arith.constant 0 : i32
    %c0_i32_0 = arith.constant 0 : i32
    return %arg0, %c0_i32 : i32, i32
  }
  func.func @transform_2(%arg0: i32) -> (i32, i32) {
    %c0_i32 = arith.constant 0 : i32
    %c0_i32_0 = arith.constant 0 : i32
    %c0_i32_1 = arith.constant 0 : i32
    return %c0_i32, %c0_i32_0 : i32, i32
  }
  func.func @transform_3(%arg0: i32) -> (i32, i32) {
    %c0_i32 = arith.constant 0 : i32
    %c0_i32_0 = arith.constant 0 : i32
    %c0_i32_1 = arith.constant 0 : i32
    return %c0_i32, %c0_i32_0 : i32, i32
  }
  func.func @transform_4(%arg0: i32) -> (i32, i32) {
    %c0_i32 = arith.constant 0 : i32
    %c0_i32_0 = arith.constant 0 : i32
    return %arg0, %c0_i32 : i32, i32
  }
}

</mosaic_0001>

<bundles_post_ra>
// kernel: tpu_custom_call.1
= control target key start
LH: loop header
LB: loop body
LE: loop exit
PB: predicated region body
PF: predicated region fallthrough
CT: control target
= control target key end

     0   :  { %s816_s0 = inlined_call_operand.hbm [shape: f32[16,128], index: 0, kind: input, shape index: {}]   ;;  %s817_s1 = inlined_call_operand.hbm [shape: f32[16,128], index: 1, kind: input, shape index: {}]   ;;  %s818_s2 = inlined_call_operand.vmem [shape: f32[1,128], index: 2, kind: input, shape index: {}]   ;;  %s819_s3 = inlined_call_operand.vmem [shape: f32[1,128], index: 3, kind: input, shape index: {}]   ;;  %s820_s4 = inlined_call_operand.hbm [shape: f32[16,128], index: 4, kind: output, shape index: {}]  }
   0x1   :  { %821 = sst [smem:[#allocation11_spill]] %s816_s0 }
   0x2   :  { %9 = vsyncpa [#allocation3], 0 }
   0x3   :  { %11 = vsyncpa [#allocation3 + $0x1], 0 }
   0x4   :  { %12 = vsyncpa [#allocation6], 0 }
   0x5   :  { %14 = vsyncpa [#allocation6 + $0x1], 0 }
   0x6   :  { %15 = vsyncpa [#allocation4], 0 }
   0x7   :  { %17 = vsyncpa [#allocation4 + $0x1], 0  ;;  %s645_s15 = smov 0   ;;  %s647_s16 = smov 0  }
   0x8   :  { %s649_s17 = smov 0   ;;  %s651_s18 = smov 0  }
   0x9 LB: > { %s666_s19 = sadd.s32 4294967295, %s618_s18   ;;  %s416_s20 = sadd.s32 4294967294, %s618_s18   ;;  %s618_s18 = sphi %s651_s18, %s833_s18   ;;  %s614_s17 = sphi %s649_s17, %s832_s17   ;;  %s610_s16 = sphi %s647_s16, %s831_s16   ;;  %s606_s15 = sphi %s645_s15, %s830_s15  }
   0xa   : > { %s670_s21 = sadd.s32 1, %s618_s18   ;;  %s30_s22 = sadd.s32 1, %s614_s17 }
   0xb   : > { %s27_s23 = ssub.s32 %s618_s18, %s670_s21  ;;  %p37_p0 = scmp.ne.s32.totalorder %s614_s17, %s610_s16 }
   0xc   : > { %p28_p1 = scmp.eq.s32.totalorder %s27_s23, 0  ;;  %p38_p2 = scmp.eq.s32.totalorder %s618_s18, 0 }
   0xd   : > { %p43_p3 = scmp.ne.s32.totalorder %s610_s16, %s606_s15  ;;  %p44_p4 = scmp.eq.s32.totalorder %s666_s19, 0 }
   0xe   : > { %s682_s24 = scalar_select %p28_p1, %s614_s17, %s30_s22  }
   0xf   : > { %p684_p5 = por %p38_p2, %p37_p0  ;;  %p688_p6 = por %p44_p4, %p43_p3 }
  0x10   : > { %p135_p7 = scmp.eq.s32.totalorder %s666_s19, 1  ;;  %p141_p8 = scmp.eq.s32.totalorder %s416_s20, 1 }
  0x11   : > { %p448_p10 = scmp.lt.s32.totalorder %s618_s18, 2  ;;  %s704_s29 = sand.u32 1, %s614_s17  }
  0x12   : > { %p695_p11 = por %p135_p7, %p37_p0  ;;  %p699_p12 = por %p141_p8, %p43_p3 }
  0x13   : > { %s420_s30 = sshll.u32 %s618_s18, 3  ;;  %s419_s5 = sshll.u32 %s704_s29, 3 }
  0x14   : > { %s826_s0 = sld [smem:[#allocation11_spill]]  ;;  %s171_s10 = scalar_lea.vmem [#allocation2], %s419_s5 }
  0x15   : > { %s179_s11 = sshll.u32 %s171_s10, 4  ;;  %p713_p13 = pnand %p448_p10, %p684_p5  ;;  %s180_s11 = int_to_ptr.vmem [resolvable:$true] %s179_s11 }
  0x16   : > { %p423_p0 = scmp.ge.s32.totalorder %s618_s18, 1  ;;  %p203_p1 = scmp.lt.s32.totalorder %s618_s18, 3 }
  0x17   : > { %s168_s13 = scalar_lea.sflag [#allocation3], %s704_s29  ;;  %p492_p3 = pneg %p713_p13 }
  0x1a   : > { %s175_s8 = scalar_lea.hbm %s826_s0, %s420_s30  ;;  %s495_s25 = scalar_lea.hbm %s826_s0, 16 }
  0x1b   : > { %s177_s9 = sshll.u32 %s175_s8, 4  ;;  %s178_s9 = int_to_ptr.hbm [resolvable:$true] %s177_s9 }
  0x1c   : > { %s488_s14 = sshra.s32 %s178_s9, 4  ;;  %s489_s14 = int_to_ptr.hbm [resolvable:$true] %s488_s14 }
  0x1d   : > { %s490_s20 = scalar_lea.hbm %s489_s14, 8  ;;  %p496_p5 = scmp.lt.s32.totalorder %s489_s14, %s826_s0 }
  0x1e   : > { %p491_p2 = scmp.ne.s32.totalorder %s489_s14, %s490_s20  ;;  %p497_p8 = scmp.lt.s32.totalorder %s495_s25, %s490_s20 }
  0x20   : > { %p493_p4 = pnand %p492_p3, %p491_p2  ;;  %p498_p10 = por %p497_p8, %p496_p5 }
  0x22   : > { %p494_p7 = pneg %p493_p4 }
  0x24   : > { %p499_p9 = pnand %p498_p10, %p494_p7 }
  0x26   : > { %502 = shalt.err (!%p499_p9)
}
  0x27   : > { %440 = dma.hbm_to_vmem [thread:$0]  (!%p713_p13), %s178_s9, 128, %s180_s11, %s168_s13  }
  0x28   : > { %p737_p2 = pnand %p423_p0, %p203_p1  ;;  %s194_s14 = scalar_lea.hbm %s817_s1, %s420_s30 }
  0x29   : > { %s196_s20 = sshll.u32 %s194_s14, 4  ;;  %s190_s23 = scalar_lea.vmem [#allocation5], %s419_s5  ;;  %s197_s20 = int_to_ptr.hbm [resolvable:$true] %s196_s20 }
  0x2a   : > { %s198_s25 = sshll.u32 %s190_s23, 4  ;;  %s187_s6 = scalar_lea.sflag [#allocation6], %s704_s29  ;;  %s199_s25 = int_to_ptr.vmem [resolvable:$true] %s198_s25 }
  0x2b   : > { %s518_s7 = sshra.s32 %s197_s20, 4  ;;  %s525_s13 = scalar_lea.hbm %s817_s1, 16  ;;  %s519_s7 = int_to_ptr.hbm [resolvable:$true] %s518_s7 }
  0x2c   : > { %s520_s0 = scalar_lea.hbm %s519_s7, 8  ;;  %p526_p4 = scmp.lt.s32.totalorder %s519_s7, %s817_s1 }
  0x2d   : > { %p521_p9 = scmp.ne.s32.totalorder %s519_s7, %s520_s0  ;;  %p527_p7 = scmp.lt.s32.totalorder %s525_s13, %s520_s0 }
  0x2f   : > { %p523_p0 = pnand %p521_p9, %p492_p3  ;;  %p528_p5 = por %p527_p7, %p526_p4 }
  0x31   : > { %p524_p1 = pneg %p523_p0 }
  0x33   : > { %p529_p8 = pnand %p528_p5, %p524_p1 }
  0x35   : > { %532 = shalt.err (!%p529_p8)
}
  0x36   : > { %443 = dma.hbm_to_vmem [thread:$0]  (!%p713_p13), %s197_s20, 128, %s199_s25, %s187_s6  }
  0x37   : > { %207 = sbr.rel (%p737_p2) target bundleno = 245 (0xf5), region = 36  ;;  %s759_s29 = sand.u32 (!%p737_p2), 1, %s610_s16  }
  0x38   : > { %s762_s5 = sshll.u32 (!%p737_p2), %s759_s29, 3  ;;  %s210_s22 = scalar_lea.sflag (!%p737_p2), [#allocation3], %s759_s29 }
  0x39   : > { %s213_s0 = scalar_lea.vmem (!%p737_p2), [#allocation2], %s762_s5 }
  0x3c   : > { %593 = dma.done.wait (%p688_p6), %s210_s22, 128  }
  0x3d   : > { %595 = vsyncadd (%p688_p6), %s210_s22, 4294967168  ;;  %s220_s12 = scalar_lea.sflag [#allocation6], %s759_s29  ;;  %s223_s8 = scalar_lea.vmem [#allocation5], %s762_s5 }
  0x3e   : > { %597 = dma.done.wait (%p688_p6), %s220_s12, 128  }
  0x3f   : > { %599 = vsyncadd (%p688_p6), %s220_s12, 4294967168  ;;  %v254_v0 = vld [vmem:[%s213_s0] sm:$0xff]  ;;  %v255_v1 = vld [vmem:[%s223_s8] sm:$0xff]  ;;  %s428_s26 = sshll.u32 %s666_s19, 3  ;;  %s253_s9 = scalar_lea.vmem [#allocation7], %s762_s5 }
  0x40   : > { %v256_v2 = vadd.f32 %v255_v1, %v254_v0  ;;  %v482_v32 = vld [vmem:[%s818_s2] ss:$0 sm:$0xff]  ;;  %s318_s6 = scalar_lea.hbm %s820_s4, %s428_s26  ;;  %s320_s11 = sshll.u32 %s253_s9, 4  ;;  %s321_s11 = int_to_ptr.vmem [resolvable:$true] %s320_s11 }
  0x41   : > { %v483_v35 = vld [vmem:[%s819_s3] ss:$0 sm:$0xff]  ;;  %s322_s13 = sshll.u32 %s318_s6, 4  ;;  %s308_s10 = scalar_lea.sflag [#allocation4], %s759_s29  ;;  %s323_s13 = int_to_ptr.hbm [resolvable:$true] %s322_s13 }
  0x42   : > { %259 = vadd.xlane.f32.xlu0 %v256_v2  ;;  %v261_v3 = vmul.f32 %v256_v2, %v256_v2  ;;  %s562_s30 = sshra.s32 %s323_s13, 4  ;;  %s568_s8 = scalar_lea.hbm %s820_s4, 16  ;;  %s563_s30 = int_to_ptr.hbm [resolvable:$true] %s562_s30 }
  0x43   : > { %s564_s22 = scalar_lea.hbm %s563_s30, 8  ;;  %p569_p10 = scmp.lt.s32.totalorder %s563_s30, %s820_s4 }
  0x44   : > { %p565_p6 = scmp.ne.s32.totalorder %s563_s30, %s564_s22  ;;  %p570_p2 = scmp.lt.s32.totalorder %s568_s8, %s564_s22 }
  0x46   : > { %p566_p13 = pnand %p565_p6, %p695_p11  ;;  %p571_p9 = por %p570_p2, %p569_p10 }
  0x48   : > { %p567_p3 = pneg %p566_p13 }
  0x4a   : > { %262 = vadd.xlane.f32.xlu0 %v261_v3  ;;  %p572_p0 = pnand %p571_p9, %p567_p3 }
  0xb5   : > { %v260_v4 = vpop.xlane.xlu0 %259 }
  0xb6   : > { %v264_v5 = vmul.f32 0.0078125, %v260_v4 }
  0xb8   : > { %v265_v6 = vmul.f32 %v264_v5, %v260_v4  ;;  %v296_v30 = vsub.f32 %v256_v2, %v264_v5 }
  0xbd   : > { %v263_v7 = vpop.xlane.xlu0 %262 }
  0xbe   : > { %v266_v8 = vsub.f32 %v263_v7, %v265_v6 }
  0xc0   : > { %v267_v9 = vmul.f32 0.007874016, %v266_v8 }
  0xc2   : > { %v268_v10 = vmax.f32 %v267_v9, 0.0 }
  0xc4   : > { %484 = vrsqrt.f32 %v268_v10  ;;  %vm276_vm0 = vcmp.eq.f32.partialorder %v268_v10, inf  ;;  %v279_v18 = vand.u32 2147483648, %v268_v10  ;;  %vm278_vm1 = vcmp.eq.f32.partialorder %v268_v10, 0.0 }
  0xca   : > { %v485_v11 = vpop.eup %484 }
  0xcb   : > { %v270_v12 = vmul.f32 %v485_v11, %v268_v10 }
  0xcd   : > { %v271_v13 = vmul.f32 %v485_v11, %v270_v12 }
  0xcf   : > { %v272_v14 = vmul.f32 0.5, %v271_v13 }
  0xd1   : > { %v273_v15 = vsub.f32 1.5, %v272_v14 }
  0xd3   : > { %v274_v16 = vmul.f32 %v485_v11, %v273_v15 }
  0xd5   : > { %v275_v17 = vmul.f32 %v274_v16, %v268_v10 }
  0xd7   : > { %v277_v19 = vsel %vm276_vm0, %v268_v10, %v275_v17 }
  0xd8   : > { %v280_v20 = vsel %vm278_vm1, %v279_v18, %v277_v19 }
  0xd9   : > { %v281_v21 = vadd.f32 1e-06, %v280_v20 }
  0xdb   : > { %486 = vrcp.f32 %v281_v21  ;;  %v293_v25 = vand.u32 2147483648, %v281_v21  ;;  %v291_v27 = vand.u32 2147483647, %v281_v21  ;;  %vm287_vm3 = vweird.f32 %v281_v21 }
  0xdd   : > { %v294_v29 = vor.u32 1.1754944e-38, %v293_v25  ;;  %vm292_vm5 = vcmp.eq.f32.partialorder %v291_v27, 8.507059e+37 }
  0xe1   : > { %v487_v22 = vpop.eup %486 }
  0xe2   : > { %v283_v23 = vmul.f32 %v487_v22, %v281_v21  ;;  %vm288_vm2 = vweird.f32 %v487_v22 }
  0xe3   : > { %vm289_vm4 = vmor %vm287_vm3, %vm288_vm2 }
  0xe4   : > { %v284_v24 = vsub.f32 1.0, %v283_v23 }
  0xe6   : > { %v285_v26 = vmul.f32 %v487_v22, %v284_v24 }
  0xe8   : > { %v286_v28 = vadd.f32 %v487_v22, %v285_v26 }
  0xea   : > { %v290_v31 = vsel %vm289_vm4, %v487_v22, %v286_v28 }
  0xeb   : > { %v295_v33 = vsel %vm292_vm5, %v294_v29, %v290_v31 }
  0xec   : > { %v297_v34 = vmul.f32 %v296_v30, %v295_v33 }
  0xee   : > { %v301_v36 = vmul.f32 %v482_v32, %v297_v34 }
  0xf0   : > { %v305_v37 = vadd.f32 %v483_v35, %v301_v36 }
  0xf2   : > { %306 = vst [vmem:[%s253_s9] sm:$0xff] %v305_v37 }
  0xf3   : > { %575 = shalt.err (!%p572_p0)
}
  0xf4   : > { %435 = dma.vmem_to_hbm [thread:$0]  (%p695_p11), %s321_s11, 128, %s323_s13, %s308_s10  }
  0xf5 PF: > { %s334_s29 = sand.u32 1, %s606_s15   ;;  %p829_p1 = scmp.ge.s32.totalorder %s618_s18, 2 }
  0xf6   : > { %s335_s14 = scalar_lea.sflag [#allocation4], %s334_s29 }
  0xf7   : > { %p445_p4 = pnand %p829_p1, %p699_p12 }
  0xf9   : > { %p446_p7 = pneg %p445_p4 }
  0xfb   : > { %601 = dma.done.wait (%p446_p7), %s335_s14, 128  }
  0xfc   : > { %603 = vsyncadd (%p446_p7), %s335_s14, 4294967168  ;;  %p20_p5 = scmp.ge.s32.totalorder %s670_s21, 4   ;;  %s830_s15 = smov %s610_s16 }
  0xfd   : > { %s831_s16 = smov %s614_s17  ;;  %s832_s17 = smov %s682_s24 }
  0xfe   : > { %s833_s18 = smov %s670_s21  ;;  %22 = sbr.rel (!%p20_p5) target bundleno = 9 (0x9), region = 94 }
 0x103   :  { %341 = vsyncpa [#allocation3], 1 }
 0x104   :  { %343 = vsyncpa [#allocation3 + $0x1], 1 }
 0x105   :  { %344 = vsyncpa [#allocation6], 1 }
 0x106   :  { %346 = vsyncpa [#allocation6 + $0x1], 1 }
 0x107   :  { %347 = vsyncpa [#allocation4], 1 }
 0x108   :  { %349 = vsyncpa [#allocation4 + $0x1], 1 }

</bundles_post_ra>
